<compile_context>
chip_gen: v6e
topology: v6e:2x2x1
jax: 0.10.0
libtpu: 0.0.40
codegen_flags: <defaults>
</compile_context>

<pallas_src>
from functools import lru_cache

import numpy as np
import jax
import jax.numpy as jnp
from jax.experimental import pallas as pl
from jax.experimental.pallas import tpu as pltpu

# ------------------------------ configuration (scaled) ------------------------------
IMG = 16                      # reference default 64
RATIO = [1, 1, 2, 4, 8]
CHANNELS = [1, 16, 32, 96, 192]
PATCH = 3
EMBED_DIM = 256
DEPTH = 2                     # reference default 9 (scaled down for the test)
NUM_HEADS = 4
MLP_RATIO = 2.0
G_EMBED = 64
G_DEPTH = 2                   # reference default 9 (scaled down for the test)
G_HEADS = 2
LOCAL_HEADS = 1


def _vmem_limit_bytes():
    """Scoped VMEM limit derived per-generation (v7x only has 64 MiB per TensorCore)."""
    try:
        cap = int(pltpu.get_tpu_info().vmem_capacity_bytes)
        return int(min(cap * 3 // 4, 96 * 1024 * 1024))
    except Exception:
        return 48 * 1024 * 1024           # safe on v5e / v6e / v7x


VMEM_LIMIT = _vmem_limit_bytes()


def _cp(axes):
    return pltpu.CompilerParams(dimension_semantics=axes, vmem_limit_bytes=VMEM_LIMIT)


def _row_tile(n, cap):
    """Largest row tile dividing n: multiple of 8 (or n itself); >=2 tiles when possible
    so both v7x TensorCores get work."""
    if n <= cap:
        if n >= 16:
            start = (min(cap, n // 2) // 8) * 8
            for t in range(start, 7, -8):
                if n % t == 0:
                    return t
        return n
    for t in range(cap, 7, -8):
        if n % t == 0:
            return t
    return n   # fallback: single full-extent row block


# =====================================================================================
# Pallas kernels
# =====================================================================================
@lru_cache(maxsize=None)
def _build_linear(N, K, M, TN, act, has_add):
    """y = act(x @ w + b) [+ add]; bf16 MXU operands, f32 accumulation."""

    def kernel(*refs):
        if has_add:
            x_ref, w_ref, b_ref, a_ref, o_ref = refs
        else:
            x_ref, w_ref, b_ref, o_ref = refs
        y = jnp.dot(x_ref[...].astype(jnp.bfloat16), w_ref[...],
                    preferred_element_type=jnp.float32)
        y = y + b_ref[...]
        if act == "leaky":
            y = jnp.where(y >= 0.0, y, 0.2 * y)
        elif act == "tanh":
            y = jnp.tanh(y)
        if has_add:
            y = y + a_ref[...]
        o_ref[...] = y

    in_specs = [
        pl.BlockSpec((TN, K), lambda i: (i, 0)),
        pl.BlockSpec((K, M), lambda i: (0, 0)),
        pl.BlockSpec((1, M), lambda i: (0, 0)),
    ]
    if has_add:
        in_specs.append(pl.BlockSpec((TN, M), lambda i: (i, 0)))

    call = pl.pallas_call(
        kernel,
        out_shape=jax.ShapeDtypeStruct((N, M), jnp.float32),
        grid_spec=pltpu.PrefetchScalarGridSpec(
            num_scalar_prefetch=0,
            grid=(pl.cdiv(N, TN),),
            in_specs=in_specs,
            out_specs=pl.BlockSpec((TN, M), lambda i: (i, 0)),
        ),
        compiler_params=_cp(("parallel",)),
    )
    return jax.jit(call)


def linear(x, w, b, act="none", add=None):
    """x: (..., K), w: (K, M) bf16, b: (M,) or (1, M) f32 -> (..., M) f32."""
    orig = x.shape
    K, M = w.shape
    x2 = x.reshape(-1, K).astype(jnp.float32)
    N = x2.shape[0]
    TN = _row_tile(N, 512)
    args = [x2, w.astype(jnp.bfloat16), b.reshape(1, M).astype(jnp.float32)]
    if add is not None:
        args.append(jnp.broadcast_to(add, (*orig[:-1], M)).reshape(N, M).astype(jnp.float32))
    y = _build_linear(N, K, M, TN, act, add is not None)(*args)
    return y.reshape(*orig[:-1], M)


@lru_cache(maxsize=None)
def _build_ln_qkv(N, D, TN):
    """q, k, v = LN(x) @ (Wq, Wk, Wv)  (qkv_bias=False, so no bias add)."""

    def kernel(x_ref, g_ref, bt_ref, wq_ref, wk_ref, wv_ref, q_ref, k_ref, v_ref):
        x = x_ref[...]
        mean = jnp.sum(x, axis=1, keepdims=True) * (1.0 / D)
        cen = x - mean
        var = jnp.sum(cen * cen, axis=1, keepdims=True) * (1.0 / D)
        ln = cen * jax.lax.rsqrt(var + 1e-5) * g_ref[...] + bt_ref[...]
        lnb = ln.astype(jnp.bfloat16)
        q_ref[...] = jnp.dot(lnb, wq_ref[...], preferred_element_type=jnp.float32)
        k_ref[...] = jnp.dot(lnb, wk_ref[...], preferred_element_type=jnp.float32)
        v_ref[...] = jnp.dot(lnb, wv_ref[...], preferred_element_type=jnp.float32)

    row = pl.BlockSpec((TN, D), lambda i: (i, 0))
    vec = pl.BlockSpec((1, D), lambda i: (0, 0))
    wsp = pl.BlockSpec((D, D), lambda i: (0, 0))
    call = pl.pallas_call(
        kernel,
        out_shape=tuple(jax.ShapeDtypeStruct((N, D), jnp.float32) for _ in range(3)),
        grid_spec=pltpu.PrefetchScalarGridSpec(
            num_scalar_prefetch=0,
            grid=(pl.cdiv(N, TN),),
            in_specs=[row, vec, vec, wsp, wsp, wsp],
            out_specs=(row, row, row),
        ),
        compiler_params=_cp(("parallel",)),
    )
    return jax.jit(call)


@lru_cache(maxsize=None)
def _build_attention(BH, S, Dh, TQ, scale):
    """Softmax attention per (batch*head); full (unpadded) K/V resident, q row-tiled."""

    def kernel(q_ref, k_ref, v_ref, o_ref):
        q = (q_ref[0] * scale).astype(jnp.bfloat16)      # scale folded into q (O(Dh))
        k = k_ref[0].astype(jnp.bfloat16)
        v = v_ref[0].astype(jnp.bfloat16)
        s = jax.lax.dot_general(q, k, (((1,), (1,)), ((), ())),
                                preferred_element_type=jnp.float32)
        m = jnp.max(s, axis=1, keepdims=True)
        p = jnp.exp(s - m)
        denom = jnp.sum(p, axis=1, keepdims=True)
        o = jnp.dot(p.astype(jnp.bfloat16), v, preferred_element_type=jnp.float32)
        o_ref[0] = o * pl.reciprocal(denom, approx=True)

    call = pl.pallas_call(
        kernel,
        out_shape=jax.ShapeDtypeStruct((BH, S, Dh), jnp.float32),
        grid_spec=pltpu.PrefetchScalarGridSpec(
            num_scalar_prefetch=0,
            grid=(BH, pl.cdiv(S, TQ)),
            in_specs=[
                pl.BlockSpec((1, TQ, Dh), lambda b, i: (b, i, 0)),
                pl.BlockSpec((1, S, Dh), lambda b, i: (b, 0, 0)),
                pl.BlockSpec((1, S, Dh), lambda b, i: (b, 0, 0)),
            ],
            out_specs=pl.BlockSpec((1, TQ, Dh), lambda b, i: (b, i, 0)),
        ),
        compiler_params=_cp(("parallel", "parallel")),
    )
    return jax.jit(call)


@lru_cache(maxsize=None)
def _build_proj_residual(N, D, TN):
    """out = x + attn @ Wproj + bproj (fused residual)."""

    def kernel(a_ref, x_ref, w_ref, b_ref, o_ref):
        y = jnp.dot(a_ref[...].astype(jnp.bfloat16), w_ref[...],
                    preferred_element_type=jnp.float32)
        o_ref[...] = x_ref[...] + y + b_ref[...]

    row = pl.BlockSpec((TN, D), lambda i: (i, 0))
    call = pl.pallas_call(
        kernel,
        out_shape=jax.ShapeDtypeStruct((N, D), jnp.float32),
        grid_spec=pltpu.PrefetchScalarGridSpec(
            num_scalar_prefetch=0,
            grid=(pl.cdiv(N, TN),),
            in_specs=[row, row,
                      pl.BlockSpec((D, D), lambda i: (0, 0)),
                      pl.BlockSpec((1, D), lambda i: (0, 0))],
            out_specs=row,
        ),
        compiler_params=_cp(("parallel",)),
    )
    return jax.jit(call)


@lru_cache(maxsize=None)
def _build_ln_mlp_residual(N, D, H, TN):
    """out = x + fc2(LeakyReLU_0.2(fc1(LN(x)))); hidden stays on-chip."""

    def kernel(x_ref, g_ref, bt_ref, w1_ref, b1_ref, w2_ref, b2_ref, o_ref):
        x = x_ref[...]
        mean = jnp.sum(x, axis=1, keepdims=True) * (1.0 / D)
        cen = x - mean
        var = jnp.sum(cen * cen, axis=1, keepdims=True) * (1.0 / D)
        ln = cen * jax.lax.rsqrt(var + 1e-5) * g_ref[...] + bt_ref[...]
        h = jnp.dot(ln.astype(jnp.bfloat16), w1_ref[...],
                    preferred_element_type=jnp.float32) + b1_ref[...]
        h = jnp.where(h >= 0.0, h, 0.2 * h)
        y = jnp.dot(h.astype(jnp.bfloat16), w2_ref[...],
                    preferred_element_type=jnp.float32) + b2_ref[...]
        o_ref[...] = x + y

    row = pl.BlockSpec((TN, D), lambda i: (i, 0))
    vec = pl.BlockSpec((1, D), lambda i: (0, 0))
    call = pl.pallas_call(
        kernel,
        out_shape=jax.ShapeDtypeStruct((N, D), jnp.float32),
        grid_spec=pltpu.PrefetchScalarGridSpec(
            num_scalar_prefetch=0,
            grid=(pl.cdiv(N, TN),),
            in_specs=[row, vec, vec,
                      pl.BlockSpec((D, H), lambda i: (0, 0)),
                      pl.BlockSpec((1, H), lambda i: (0, 0)),
                      pl.BlockSpec((H, D), lambda i: (0, 0)),
                      vec],
            out_specs=row,
        ),
        compiler_params=_cp(("parallel",)),
    )
    return jax.jit(call)


# =====================================================================================
# Transformer block (fused kernels)
# =====================================================================================
def block_forward(x, p, num_heads):
    B, S, D = x.shape
    N = B * S
    Dh = D // num_heads
    TN = _row_tile(N, 512)

    x2 = x.reshape(N, D).astype(jnp.float32)

    q, k, v = _build_ln_qkv(N, D, TN)(x2, p["ln1_g"], p["ln1_b"],
                                      p["wq"], p["wk"], p["wv"])

    if num_heads == 1:
        qh, kh, vh = (t.reshape(B, S, D) for t in (q, k, v))
    else:
        def split(t):
            return jnp.transpose(t.reshape(B, S, num_heads, Dh),
                                 (0, 2, 1, 3)).reshape(B * num_heads, S, Dh)
        qh, kh, vh = split(q), split(k), split(v)

    TQ = _row_tile(S, 256)
    scale = float(Dh) ** -0.5
    attn = _build_attention(B * num_heads, S, Dh, TQ, scale)(qh, kh, vh)

    if num_heads == 1:
        a2 = attn.reshape(N, D)
    else:
        a2 = jnp.transpose(attn.reshape(B, num_heads, S, Dh),
                           (0, 2, 1, 3)).reshape(N, D)

    x2 = _build_proj_residual(N, D, TN)(a2, x2, p["proj_w"], p["proj_b"])

    Hd = p["fc1_w"].shape[1]
    x2 = _build_ln_mlp_residual(N, D, Hd, TN)(
        x2, p["ln2_g"], p["ln2_b"],
        p["fc1_w"], p["fc1_b"], p["fc2_w"], p["fc2_b"])
    return x2.reshape(B, S, D)


# =====================================================================================
# Plain-JAX glue: unfold (im2col), trilinear resize, sinusoid PE
# =====================================================================================
def unfold3d(x, patch, stride, padding):
    """x: (B, C, D, H, W) -> (B, C*patch^3, L); matches torch UnfoldNd channel ordering."""
    B, C, D, H, W = x.shape
    xp = jnp.pad(x, ((0, 0), (0, 0), (padding,) * 2, (padding,) * 2, (padding,) * 2))
    Do = (D + 2 * padding - patch) // stride + 1
    Ho = (H + 2 * padding - patch) // stride + 1
    Wo = (W + 2 * padding - patch) // stride + 1
    cols = []
    for kd in range(patch):
        for kh in range(patch):
            for kw in range(patch):
                cols.append(xp[:, :,
                               kd:kd + Do * stride:stride,
                               kh:kh + Ho * stride:stride,
                               kw:kw + Wo * stride:stride])
    col = jnp.stack(cols, axis=2)                    # (B, C, p^3, Do, Ho, Wo)
    return col.reshape(B, C * patch ** 3, Do * Ho * Wo)


def _resize_axis(x, axis, out_sz):
    in_sz = x.shape[axis]
    if out_sz == in_sz:
        return x
    if out_sz == 1:
        c = jnp.zeros((1,), jnp.float32)
    else:
        c = jnp.arange(out_sz, dtype=jnp.float32) * (in_sz - 1) / (out_sz - 1)
    i0 = jnp.floor(c).astype(jnp.int32)
    i1 = jnp.minimum(i0 + 1, in_sz - 1)
    w1 = c - i0.astype(jnp.float32)
    w0 = 1.0 - w1
    x0 = jnp.take(x, i0, axis=axis)
    x1 = jnp.take(x, i1, axis=axis)
    shp = [1] * x.ndim
    shp[axis] = out_sz
    return x0 * w0.reshape(shp) + x1 * w1.reshape(shp)


def trilinear_resize(x, out_size):
    """align_corners=True trilinear resize of (B, C, D, H, W)."""
    for ax, sz in zip((2, 3, 4), out_size):
        x = _resize_axis(x, ax, sz)
    return x


def get_sinusoid_encoding(n_position, d_hid):
    pos = np.arange(n_position)[:, None].astype(np.float64)
    i = np.arange(d_hid)[None, :]
    angle = pos / np.power(10000.0, 2.0 * (i // 2) / d_hid)
    table = np.zeros((n_position, d_hid))
    table[:, 0::2] = np.sin(angle[:, 0::2])
    table[:, 1::2] = np.cos(angle[:, 1::2])
    return jnp.asarray(table[None], dtype=jnp.float32)


# =====================================================================================
# Model pieces
# =====================================================================================
def unfold_block_forward(x5d, p, patch, stride, padding, attention=True,
                         num_heads=LOCAL_HEADS):
    col = unfold3d(x5d, patch, stride, padding)
    x = jnp.transpose(col, (0, 2, 1))                    # (B, L, C*p^3)
    if attention:
        x = linear(x, p["proj_w"], p["proj_b"])
        x = block_forward(x, p["block"], num_heads)
    return x


def upfold_block_forward(x5d, p, patch, padding, up_scale, SC=None, reshape=True,
                         num_heads=LOCAL_HEADS):
    B = x5d.shape[0]
    if up_scale > 1:
        D, H, W = x5d.shape[2:]
        x5d = trilinear_resize(x5d, (D * up_scale, H * up_scale, W * up_scale))
    if SC is not None:
        x5d = jnp.concatenate([x5d, SC], axis=1)
    Dn, Hn, Wn = x5d.shape[2:]
    x = jnp.transpose(unfold3d(x5d, patch, 1, padding), (0, 2, 1))
    x = linear(x, p["proj_w"], p["proj_b"])
    x = block_forward(x, p["block"], num_heads)
    if reshape:
        x = jnp.transpose(x, (0, 2, 1)).reshape(B, -1, Dn, Hn, Wn)
    return x


def trans_global_forward(x, g):
    """x: (B, 1, GS, GS, GS) with GS = IMG // 4."""
    B = x.shape[0]
    GS = x.shape[2]
    h = jnp.transpose(unfold3d(x, 3, 1, 1), (0, 2, 1))        # (B, GS^3, 27)
    h = linear(h, g["bot_proj_w"], g["bot_proj_b"], add=g["PE"])   # PE add fused
    for blk in g["blocks"]:
        h = block_forward(h, blk, G_HEADS)
    h = linear(h, g["bot_proj2_w"], g["bot_proj2_b"])          # (B, GS^3, 32)
    return jnp.transpose(h, (0, 2, 1)).reshape(B, 32, GS, GS, GS)


def ptnet_forward(x, params):
    B = x.shape[0]
    x0 = x
    sizes = [IMG // r for r in RATIO]

    # Global branch on 0.25x-resized volume (align_corners=True trilinear).
    small = trilinear_resize(x, (IMG // 4,) * 3)
    global_feat = trans_global_forward(small, params["global"])

    # Encoder (skip_connection=True branch).
    SC = []
    strides = [1, 2, 2]
    x_cur = x
    for i in range(3):
        y = unfold_block_forward(x_cur, params["down"][i], PATCH, strides[i], 1,
                                 attention=True)
        sz = sizes[i + 1]
        x_cur = jnp.transpose(y, (0, 2, 1)).reshape(B, -1, sz, sz, sz)
        if i == 2:
            x_cur = jnp.concatenate([x_cur, global_feat], axis=1)
        SC.append(x_cur)

    # Last down block with attention=False -> raw unfolded patches.
    h = jnp.transpose(unfold3d(x_cur, PATCH, 2, 1), (0, 2, 1))        # (B, L, 96*27)
    h = linear(h, params["bot_proj_w"], params["bot_proj_b"], add=params["PE"])
    for blk in params["bottleneck"]:
        h = block_forward(h, blk, NUM_HEADS)
    h = linear(h, params["bot_proj2_w"], params["bot_proj2_b"])        # (B, L, 96)
    sz = sizes[-1]
    x_cur = jnp.transpose(h, (0, 2, 1)).reshape(B, 96, sz, sz, sz)

    # Decoder.
    ups = params["up"]
    x_cur = upfold_block_forward(x_cur, ups[0], PATCH, 1, 2, SC=SC[-1], reshape=True)
    x_cur = upfold_block_forward(x_cur, ups[1], PATCH, 1, 2, SC=SC[-2], reshape=True)
    x_cur = upfold_block_forward(x_cur, ups[2], PATCH, 1, 2, SC=SC[0], reshape=True)
    y = upfold_block_forward(x_cur, ups[3], PATCH, 1, 1, SC=x0, reshape=False)

    y = linear(y, params["final_w"], params["final_b"], act="tanh")    # tanh fused
    y = jnp.transpose(y, (0, 2, 1)).reshape(B, 1, IMG, IMG, IMG)
    return y


# =====================================================================================
# Parameter construction (deterministic, synthetic); matmul weights stored in bf16
# =====================================================================================
def init_params(key):
    keys = iter(jax.random.split(key, 256))

    def w_init(din, dout):
        return (0.02 * jax.random.normal(next(keys), (din, dout),
                                         dtype=jnp.float32)).astype(jnp.bfloat16)

    def dense(din, dout):
        return w_init(din, dout), jnp.zeros((dout,), jnp.float32)

    def block(dim):
        hidden = int(dim * MLP_RATIO)
        return dict(
            ln1_g=jnp.ones((1, dim), jnp.float32), ln1_b=jnp.zeros((1, dim), jnp.float32),
            wq=w_init(dim, dim), wk=w_init(dim, dim), wv=w_init(dim, dim),  # qkv_bias=False
            proj_w=w_init(dim, dim), proj_b=jnp.zeros((1, dim), jnp.float32),
            ln2_g=jnp.ones((1, dim), jnp.float32), ln2_b=jnp.zeros((1, dim), jnp.float32),
            fc1_w=w_init(dim, hidden), fc1_b=jnp.zeros((1, hidden), jnp.float32),
            fc2_w=w_init(hidden, dim), fc2_b=jnp.zeros((1, dim), jnp.float32),
        )

    params = {}

    # --- Trans_global ---
    g = {}
    g["bot_proj_w"], g["bot_proj_b"] = dense(27, G_EMBED)
    g["bot_proj2_w"], g["bot_proj2_b"] = dense(G_EMBED, 32)
    g["PE"] = get_sinusoid_encoding((IMG // 4) ** 3, G_EMBED)
    g["blocks"] = [block(G_EMBED) for _ in range(G_DEPTH)]
    params["global"] = g

    # --- encoder (down) blocks with attention ---
    params["down"] = []
    for cin, cout in [(1, 16), (16, 32), (32, 64)]:
        d = {}
        d["proj_w"], d["proj_b"] = dense(cin * 27, cout)
        d["block"] = block(cout)
        params["down"].append(d)
    # down_blocks[-1] (96 -> 192) is used with attention=False, so its proj/attn are unused.

    # --- bottleneck ---
    params["bot_proj_w"], params["bot_proj_b"] = dense(CHANNELS[-2] * 27, EMBED_DIM)
    params["bot_proj2_w"], params["bot_proj2_b"] = dense(EMBED_DIM, CHANNELS[-2])
    params["PE"] = get_sinusoid_encoding((IMG // RATIO[-1]) ** 3, EMBED_DIM)
    params["bottleneck"] = [block(EMBED_DIM) for _ in range(DEPTH)]

    # --- decoder (up) blocks ---
    params["up"] = []
    for cin, cout in [(2 * 96, 32), (2 * 32, 16), (2 * 16, 16), (16 + 1, 16)]:
        u = {}
        u["proj_w"], u["proj_b"] = dense(cin * 27, cout)
        u["block"] = block(cout)
        params["up"].append(u)

    params["final_w"], params["final_b"] = dense(CHANNELS[1], 1)
    return params


# =====================================================================================
if __name__ == "__main__":
    root = jax.random.PRNGKey(0)
    x_key, p_key = jax.random.split(root)
    x = jax.random.normal(x_key, (1, 1, IMG, IMG, IMG), dtype=jnp.float32)
    params = init_params(p_key)

    out = ptnet_forward(x, params)
    out = jax.block_until_ready(out)

    assert out.shape == (1, 1, IMG, IMG, IMG), out.shape
    assert bool(jnp.all(jnp.isfinite(out)))
    assert bool(jnp.all(jnp.abs(out) <= 1.0 + 1e-6))  # tanh output range
    print("KERNEL_OK")
</pallas_src>

<mosaic_0001>
module attributes {stable_mosaic.version = 11 : i64} {
  func.func @kernel(%arg0: i32, %arg1: memref<32x27xf32, #tpu.memory_space<vmem>>, %arg2: memref<27x64xbf16, #tpu.memory_space<vmem>>, %arg3: memref<1x64xf32, #tpu.memory_space<vmem>>, %arg4: memref<32x64xf32, #tpu.memory_space<vmem>>, %arg5: memref<32x64xf32, #tpu.memory_space<vmem>>) attributes {dimension_semantics = [#tpu.dimension_semantics<parallel>], iteration_bounds = array<i64: 2>, scalar_prefetch = 0 : i64, scratch_operands = 0 : i64, tpu.core_type = #tpu.core_type<tc>, window_params = [{transform_indices = @transform_0, window_bounds = array<i64: 32, 27>}, {pipeline_mode = #tpu.pipeline_mode<synchronous>, transform_indices = @transform_1, window_bounds = array<i64: 27, 64>}, {pipeline_mode = #tpu.pipeline_mode<synchronous>, transform_indices = @transform_2, window_bounds = array<i64: 1, 64>}, {transform_indices = @transform_3, window_bounds = array<i64: 32, 64>}, {transform_indices = @transform_4, window_bounds = array<i64: 32, 64>}]} {
    %c0 = arith.constant 0 : index
    %c0_0 = arith.constant 0 : index
    %0 = vector.load %arg1[%c0, %c0_0] : memref<32x27xf32, #tpu.memory_space<vmem>>, vector<32x27xf32>
    %1 = arith.truncf %0 : vector<32x27xf32> to vector<32x27xbf16>
    %c0_1 = arith.constant 0 : index
    %c0_2 = arith.constant 0 : index
    %2 = vector.load %arg2[%c0_1, %c0_2] : memref<27x64xbf16, #tpu.memory_space<vmem>>, vector<27x64xbf16>
    %cst = arith.constant dense<0.000000e+00> : vector<32x64xf32>
    %3 = tpu.matmul %1, %2, %cst {dimension_numbers = #tpu.dot_dimension_numbers<[1], [0], [0], [1], [0, 0, 1, 1], [], []>} : vector<32x27xbf16>, vector<27x64xbf16>, vector<32x64xf32> -> vector<32x64xf32>
    %c0_3 = arith.constant 0 : index
    %c0_4 = arith.constant 0 : index
    %4 = vector.load %arg3[%c0_3, %c0_4] : memref<1x64xf32, #tpu.memory_space<vmem>>, vector<1x64xf32>
    %5 = vector.broadcast %4 : vector<1x64xf32> to vector<32x64xf32>
    %6 = arith.addf %3, %5 : vector<32x64xf32>
    %c0_5 = arith.constant 0 : index
    %c0_6 = arith.constant 0 : index
    %7 = vector.load %arg4[%c0_5, %c0_6] : memref<32x64xf32, #tpu.memory_space<vmem>>, vector<32x64xf32>
    %8 = arith.addf %6, %7 : vector<32x64xf32>
    %c0_7 = arith.constant 0 : index
    %c0_8 = arith.constant 0 : index
    %9 = vector.load %arg5[%c0_7, %c0_8] : memref<32x64xf32, #tpu.memory_space<vmem>>, vector<32x64xf32>
    tpu.vector_store %arg5[%c0_7, %c0_8], %8 {strides = array<i32>} : memref<32x64xf32, #tpu.memory_space<vmem>>, vector<32x64xf32>,
    return
  }
  func.func @transform_0(%arg0: i32) -> (i32, i32) {
    %c0_i32 = arith.constant 0 : i32
    %c0_i32_0 = arith.constant 0 : i32
    return %arg0, %c0_i32 : i32, i32
  }
  func.func @transform_1(%arg0: i32) -> (i32, i32) {
    %c0_i32 = arith.constant 0 : i32
    %c0_i32_0 = arith.constant 0 : i32
    %c0_i32_1 = arith.constant 0 : i32
    return %c0_i32, %c0_i32_0 : i32, i32
  }
  func.func @transform_2(%arg0: i32) -> (i32, i32) {
    %c0_i32 = arith.constant 0 : i32
    %c0_i32_0 = arith.constant 0 : i32
    %c0_i32_1 = arith.constant 0 : i32
    return %c0_i32, %c0_i32_0 : i32, i32
  }
  func.func @transform_3(%arg0: i32) -> (i32, i32) {
    %c0_i32 = arith.constant 0 : i32
    %c0_i32_0 = arith.constant 0 : i32
    return %arg0, %c0_i32 : i32, i32
  }
  func.func @transform_4(%arg0: i32) -> (i32, i32) {
    %c0_i32 = arith.constant 0 : i32
    %c0_i32_0 = arith.constant 0 : i32
    return %arg0, %c0_i32 : i32, i32
  }
}

</mosaic_0001>

<bundles_post_ra>
// kernel: tpu_custom_call.1
= control target key start
LH: loop header
LB: loop body
LE: loop exit
PB: predicated region body
PF: predicated region fallthrough
CT: control target
= control target key end

     0   :  { %9 = vsyncpa [#allocation3], 0  ;;  %s702_s0 = inlined_call_operand.vmem [shape: f32[64,27], index: 0, kind: input, shape index: {}]   ;;  %s703_s1 = inlined_call_operand.vmem [shape: bf16[27,64], index: 1, kind: input, shape index: {}]   ;;  %s704_s2 = inlined_call_operand.vmem [shape: f32[1,64], index: 2, kind: input, shape index: {}]   ;;  %s705_s3 = inlined_call_operand.vmem [shape: f32[64,64], index: 3, kind: input, shape index: {}]   ;;  %s706_s4 = inlined_call_operand.hbm [shape: f32[64,64], index: 4, kind: output, shape index: {}]  }
   0x1   :  { %11 = vsyncpa [#allocation3 + $0x1], 0  ;;  %s581_s15 = smov 0   ;;  %s583_s16 = smov 0  }
   0x2   :  { %s585_s17 = smov 0   ;;  %s587_s18 = smov 0  }
   0x3 LB: > { %s602_s19 = sadd.s32 4294967295, %s550_s18   ;;  %s414_s20 = sadd.s32 4294967294, %s550_s18   ;;  %s550_s18 = sphi %s587_s18, %s712_s18   ;;  %s546_s17 = sphi %s585_s17, %s711_s17   ;;  %s542_s16 = sphi %s583_s16, %s710_s16   ;;  %s538_s15 = sphi %s581_s15, %s709_s15  }
   0x4   : > { %s606_s21 = sadd.s32 1, %s550_s18   ;;  %s118_s22 = sadd.s32 1, %s546_s17 }
   0x5   : > { %s115_s23 = ssub.s32 %s550_s18, %s606_s21  ;;  %p128_p0 = scmp.ne.s32.totalorder %s546_s17, %s542_s16 }
   0x6   : > { %p116_p1 = scmp.eq.s32.totalorder %s115_s23, 0  ;;  %p129_p2 = scmp.eq.s32.totalorder %s602_s19, 1 }
   0x7   : > { %p134_p3 = scmp.ne.s32.totalorder %s542_s16, %s538_s15  ;;  %p135_p4 = scmp.eq.s32.totalorder %s414_s20, 1 }
   0x8   : > { %s617_s24 = scalar_select %p116_p1, %s546_s17, %s118_s22  }
   0x9   : > { %p619_p5 = por %p129_p2, %p128_p0  ;;  %p623_p6 = por %p135_p4, %p134_p3 }
   0xa   : > { %p417_p7 = scmp.ge.s32.totalorder %s550_s18, 1  ;;  %p177_p8 = scmp.lt.s32.totalorder %s550_s18, 3 }
   0xc   : > { %p178_p9 = pnand %p417_p7, %p177_p8 }
   0xd   : > { %s419_s29 = sshll.u32 (!%p178_p9), %s602_s19, 2  ;;  %s205_s10 = sand.u32 (!%p178_p9), 1, %s542_s16  }
   0xe   : > { %181 = sbr.rel (%p178_p9) target bundleno = 249 (0xf9), region = 36  ;;  %p209_p10 = scmp.lt.s32.totalorder (!%p178_p9), %s419_s29, 7 }
   0xf   : > { %s418_s22 = sshll.u32 (!%p178_p9), %s205_s10, 5  ;;  %s433_s28 = sshll.u32 (!%p178_p9), %s602_s19, 9 }
  0x10   : > { %s207_s23 = scalar_lea.vmem (!%p178_p9), [#allocation2], %s418_s22  ;;  %s654_s5 = scalar_lea.hbm (!%p178_p9), %s706_s4, %s433_s28 }
  0x11   : > { %s340_s27 = sshll.u32 (!%p178_p9), %s207_s23, 4  ;;  %s662_s19 = scalar_lea.sflag (!%p178_p9), [#allocation3], %s205_s10  ;;  %s656_s27 = int_to_ptr.vmem [resolvable:$true] %s340_s27 }
  0x12   : > { %s553_s7 = smov (!%p178_p9), [#allocation2]  }
  0x13   : > { %v488_v0 = vld [vmem:[%s703_s1 + $0x8] sm:$0x3f]   ;;  %vm257_vm0 = vcmask 1044480   ;;  %vm258_vm1 = vcmask 1045504   ;;  %v552_v1 = vmov 65535   ;;  %v489_v5 = vld [vmem:[%s703_s1] sm:$0xff]  }
  0x14   : > { %v259_v2 = vsel %vm257_vm0, 4294967295, %v552_v1  ;;  %s714_s29 = smov (!%p209_p10, %s419_s29), 7  ;;  %vm250_vm2 = vcmask 220160   ;;  %v423_v12 = vld [vmem:[%s704_s2] ss:$0 sm:$0xff]  ;;  %vm321_vm3 = vcmask 523264  }
  0x15   : > { %v260_v3 = vsel %vm258_vm1, %v259_v2, 0  ;;  %s420_s6 = sshll.u32 %s714_s29, 3  ;;  %s494_s8 = sshll.u32 %s553_s7, 4  ;;  %s495_s8 = int_to_ptr.vmem [resolvable:$false] %s494_s8 }
  0x16   : > { %v262_v4 = vand.u32 %v488_v0, %v260_v3  ;;  %s212_s9 = scalar_lea.vmem %s702_s0, %s420_s6  ;;  %s218_s13 = scalar_lea.vmem %s705_s3, %s420_s6 }
  0x17   : > { %v222_v6 = vld [vmem:[%s212_s9] sm:$0xff]  ;;  %v223_v7 = vld [vmem:[%s212_s9 + $0x8] sm:$0xff]  ;;  %v224_v8 = vld [vmem:[%s212_s9 + $0x10] sm:$0xff]  ;;  %s490_s6 = scalar_lea.vmem %s656_s27, 512  ;;  %p497_p0 = scmp.lt.s32.totalorder %s656_s27, %s495_s8 }
  0x18   : > { %438 = vmatprep.subr.bf16.mxu0 %v262_v4  ;;  %v226_v9 = vpack.c.bf16 %v223_v7, %v222_v6  ;;  %v225_v10 = vld [vmem:[%s212_s9 + $0x18] sm:$0xff]  ;;  %v315_v14 = vld [vmem:[%s218_s13 + $0x10] sm:$0xff]  ;;  %v313_v17 = vld [vmem:[%s218_s13] sm:$0xff]  ;;  %p491_p11 = scmp.ne.s32.totalorder %s656_s27, %s490_s6  ;;  %s496_s9 = scalar_lea.vmem %s495_s8, 1024 }
  0x19   : > { %439 = vmatpush3.bf16.msra.mxu0 %v262_v4  ;;  %v227_v11 = vpack.c.bf16 %v225_v10, %v224_v8  ;;  %v316_v21 = vld [vmem:[%s218_s13 + $0x18] sm:$0xff]  ;;  %v314_v25 = vld [vmem:[%s218_s13 + $0x8] sm:$0xff]  ;;  %p498_p1 = scmp.lt.s32.totalorder %s496_s9, %s490_s6 }
  0x1a   : > { %440 = vmatprep.subr.bf16.mxu0 %v489_v5  ;;  %442 = vmatprep.mubr.msk.bf16.mxu0 %vm250_vm2, %v226_v9  ;;  %p492_p12 = pnand %p491_p11, %p619_p5 }
  0x1b   : > { %p499_p2 = por %p498_p1, %p497_p0 }
  0x1c   : > { %p493_p13 = pneg %p492_p12 }
  0x1d   : > { %441 = vmatpush3.bf16.msra.mxu0 %v489_v5 }
  0x1e   : > { %p500_p3 = pnand %p499_p2, %p493_p13 }
  0x20   : > { %443 = vmatmul.mubr.msk.bf16.vlgmr.msra.gmra.mxu0 %vm250_vm2, %v227_v11 }
  0xe0   : > { %v444_v13 = vpop.f32.mrf.mxu0 }
  0xe1   : > { %v307_v15 = vadd.f32 %v444_v13, %v423_v12 }
  0xe2   : > { %v298_v16 = vpop.f32.mrf.mxu0 }
  0xe3   : > { %v319_v18 = vadd.f32 %v315_v14, %v307_v15  ;;  %v299_v19 = vadd.f32 %v423_v12, %v298_v16 }
  0xe4   : > { %v445_v20 = vpop.f32.mrf.mxu0 }
  0xe5   : > { %324 = vst.msk [vmem:[%s207_s23 + $0x10] sm:$0xff] %vm321_vm3, %v319_v18  ;;  %v317_v22 = vadd.f32 %v313_v17, %v299_v19  ;;  %v310_v23 = vadd.f32 %v445_v20, %v423_v12 }
  0xe6   : > { %v301_v24 = vpop.f32.mrf.mxu0 }
  0xe7   : > { %322 = vst.msk [vmem:[%s207_s23] sm:$0xff] %vm321_vm3, %v317_v22  ;;  %v320_v26 = vadd.f32 %v316_v21, %v310_v23  ;;  %v302_v27 = vadd.f32 %v423_v12, %v301_v24 }
  0xe9   : > { %325 = vst.msk [vmem:[%s207_s23 + $0x18] sm:$0xff] %vm321_vm3, %v320_v26  ;;  %v318_v28 = vadd.f32 %v314_v25, %v302_v27 }
  0xeb   : > { %323 = vst.msk [vmem:[%s207_s23 + $0x8] sm:$0xff] %vm321_vm3, %v318_v28 }
  0xec   : > { %503 = shalt.err (!%p500_p3)
}
  0xed   : > { %s504_s10 = scalar_lea.hbm %s654_s5, 512  ;;  %s508_s13 = scalar_lea.hbm %s706_s4, 1024 }
  0xee   : > { %p505_p4 = scmp.ne.s32.totalorder %s654_s5, %s504_s10  ;;  %p509_p9 = scmp.lt.s32.totalorder %s654_s5, %s706_s4 }
  0xef   : > { %p510_p10 = scmp.lt.s32.totalorder %s508_s13, %s504_s10 }
  0xf0   : > { %p506_p7 = pnand %p505_p4, %p619_p5 }
  0xf1   : > { %p511_p11 = por %p510_p10, %p509_p9 }
  0xf2   : > { %p507_p8 = pneg %p506_p7 }
  0xf4   : > { %p512_p12 = pnand %p511_p11, %p507_p8 }
  0xf6   : > { %515 = shalt.err (!%p512_p12)
}
  0xf7   : > { %s554_s22 = smov 128   ;;  %s555_s23 = smov 8  }
  0xf8   : > { %446 = dma.vmem_to_hbm [thread:$0]  (%p619_p5), %s656_s27, 512, %s654_s5, %s662_s19, %s554_s22, %s554_s22, %s555_s23  }
  0xf9 PF: > { %p452_p13 = scmp.ge.s32.totalorder %s550_s18, 2  ;;  %s355_s28 = sand.u32 1, %s538_s15  }
  0xfa   : > { %s356_s29 = scalar_lea.sflag [#allocation3], %s355_s28 }
  0xfb   : > { %p449_p0 = pnand %p452_p13, %p623_p6 }
  0xfd   : > { %p450_p1 = pneg %p449_p0 }
  0xff   : > { %533 = dma.done.wait (%p450_p1), %s356_s29, 512  }
 0x100   : > { %535 = vsyncadd (%p450_p1), %s356_s29, 4294966784  ;;  %p14_p2 = scmp.ge.s32.totalorder %s606_s21, 4   ;;  %s709_s15 = smov %s542_s16 }
 0x101   : > { %s710_s16 = smov %s546_s17  ;;  %s711_s17 = smov %s617_s24 }
 0x102   : > { %s712_s18 = smov %s606_s21  ;;  %16 = sbr.rel (!%p14_p2) target bundleno = 3 (0x3), region = 74 }
 0x107   :  { %361 = vsyncpa [#allocation3], 1 }
 0x108   :  { %363 = vsyncpa [#allocation3 + $0x1], 1 }

</bundles_post_ra>
